<compile_context>
chip_gen: v5e
topology: v5e:2x2
jax: 0.10.0
libtpu: 0.0.40
codegen_flags: <defaults>
</compile_context>

<pallas_src>
import jax
import jax.numpy as jnp
from jax.experimental import pallas as pl
from jax.experimental.pallas import tpu as pltpu


def _seq_attn_kernel(x_ref, mask_ref, wc_ref, bc_ref, w_ref, b_ref, out_ref):
    # x_ref   : (TB*L, D_in) f32   flattened (batch, len) rows of this grid step
    # mask_ref: (TB, L)      i32   nonzero => masked out (like the ByteTensor mask)
    # wc_ref  : (D_in, D_h)  bf16  conv1x1 weight (transposed), VMEM-resident
    # bc_ref  : (1, D_h)     f32   conv1x1 bias, VMEM-resident
    # w_ref   : (1, D_h)     f32   Linear(D_h, 1) weight as a row, VMEM-resident
    # b_ref   : (1, 1)       f32   Linear bias (SMEM scalar)
    # out_ref : (TB, L)      f32   alpha = softmax(scores) over L
    tb, seq_len = out_ref.shape

    # In-kernel bf16 cast of the x stream (VPU work hidden under DMA/MXU); avoids a
    # standalone XLA convert pass over x in HBM before the kernel.
    x_bf16 = x_ref[...].astype(jnp.bfloat16)

    # conv1d(kernel_size=1) == per-position matmul: bf16 on the MXU, f32 accumulate.
    h = jnp.dot(x_bf16, wc_ref[...], preferred_element_type=jnp.float32)
    h = jnp.maximum(h + bc_ref[...], 0.0)                              # (TB*L, D_h) f32

    # Linear(D_h, 1): N=1 matmul replaced by VPU multiply + lane reduce (MXU stays free).
    s = jnp.sum(h * w_ref[...], axis=-1, keepdims=True) + b_ref[0, 0]  # (TB*L, 1)
    # (TB*L,1) -> (TB,L): small per-step relayout (a few KiB); with TB >= 128 an
    # (L, TB) lane-dense layout would remove it entirely.
    s = s.reshape(tb, seq_len)

    # masked_fill: large finite negative (== -inf behavior for partially-masked rows,
    # avoids NaN on fully-masked rows, which become uniform instead).
    s = jnp.where(mask_ref[...] != 0, jnp.float32(-1e30), s)

    # Row softmax over the len axis, all in f32. Exact divide so every row sums to 1
    # to f32 precision (the approx reciprocal previously violated the sum-to-1 check).
    m = jnp.max(s, axis=1, keepdims=True)
    e = jnp.exp(s - m)
    denom = jnp.sum(e, axis=1, keepdims=True)
    out_ref[...] = e / denom


def _pick_tb(batch, seq_len, d_in, *, max_tile_bytes=12 * 1024 * 1024):
    """Pick batches-per-grid-step.

    Legal block shapes require tb == batch, or (batch % tb == 0 and tb % 8 == 0).
    Preference order: >= 2 grid steps (double-buffered DMA/compute overlap and work
    for both v7x TensorCores), then the largest f32 x tile under the VMEM budget.
    """
    bytes_per_batch = seq_len * d_in * 4          # f32 x rows per batch element
    cap = max(1, max_tile_bytes // bytes_per_batch)

    cands = [tb for tb in range(8, batch + 1, 8) if batch % tb == 0 and tb <= cap]
    multi = [tb for tb in cands if batch // tb >= 2]
    if multi:
        return max(multi)
    if cands:
        return max(cands)
    return batch  # fallback: single whole-batch block (always a legal block shape)


def _vmem_limit_bytes(tb, seq_len, d_in, d_h):
    """Derive the VMEM limit from the actual tile footprint (+50% and a fixed margin
    for compiler-internal scratch) instead of a hard-coded number."""
    rows = tb * seq_len
    x_tile = rows * d_in * 4                     # f32 x stream tile
    x_cast = rows * d_in * 2                     # in-kernel bf16 copy
    h_tmp = rows * d_h * 4                       # f32 hidden temp
    small = 2 * 2 * (tb * seq_len * 4)           # mask + out, double-buffered
    weights = d_in * d_h * 2 + 3 * d_h * 4       # resident bf16 W_conv + f32 biases/w_row
    footprint = 2 * x_tile + x_cast + h_tmp + small + weights
    return max(16 * 1024 * 1024, int(footprint * 1.5) + (4 << 20))


def linear_seq_attn_ques(question_hiddens, x_mask, conv_w, conv_b, lin_w, lin_b,
                         *, tb=None, max_tile_bytes=12 * 1024 * 1024):
    """question_hiddens: (B, L, D_in) f32; x_mask: (B, L) int (0 = keep).
    conv_w: (D_h, D_in, 1); conv_b: (D_h,); lin_w: (1, D_h); lin_b: (1,).
    Raise max_tile_bytes (e.g. 24-48 MiB) on v5e/v6e which have 128 MiB VMEM."""
    B, L, Din = question_hiddens.shape
    Dh = conv_w.shape[0]

    if tb is None:
        tb = _pick_tb(B, L, Din, max_tile_bytes=max_tile_bytes)
    assert tb == B or (B % tb == 0 and tb % 8 == 0), (B, L, tb)
    nb = B // tb

    # x stays f32: the (B,L,Din)->(B*L,Din) reshape is a free contiguous reshape;
    # the bf16 cast happens inside the kernel (no extra HBM round-trip).
    x_flat = question_hiddens.reshape(B * L, Din)
    wc_t = conv_w[:, :, 0].T.astype(jnp.bfloat16)            # (Din, Dh), MXU operand
    bc = conv_b.reshape(1, Dh).astype(jnp.float32)           # (1, Dh)
    w_row = lin_w.reshape(1, Dh).astype(jnp.float32)         # (1, Dh)
    b_sc = lin_b.reshape(1, 1).astype(jnp.float32)           # (1, 1) scalar
    mask = x_mask.astype(jnp.int32)

    grid_spec = pltpu.PrefetchScalarGridSpec(
        num_scalar_prefetch=0,
        grid=(nb,),
        in_specs=[
            # streamed per grid step (double-buffered by the Pallas pipeline)
            pl.BlockSpec((tb * L, Din), lambda i: (i, 0)),
            pl.BlockSpec((tb, L), lambda i: (i, 0)),
            # weights/biases: constant block index -> stay resident in VMEM
            pl.BlockSpec((Din, Dh), lambda i: (0, 0)),
            pl.BlockSpec((1, Dh), lambda i: (0, 0)),
            pl.BlockSpec((1, Dh), lambda i: (0, 0)),
            # scalar Linear bias in SMEM
            pl.BlockSpec((1, 1), lambda i: (0, 0),
                         memory_space=pltpu.MemorySpace.SMEM),
        ],
        out_specs=pl.BlockSpec((tb, L), lambda i: (i, 0)),
    )

    return pl.pallas_call(
        _seq_attn_kernel,
        out_shape=jax.ShapeDtypeStruct((B, L), jnp.float32),
        grid_spec=grid_spec,
        compiler_params=pltpu.CompilerParams(
            dimension_semantics=("parallel",),                 # independent batch chunks
            vmem_limit_bytes=_vmem_limit_bytes(tb, L, Din, Dh),
        ),
    )(x_flat, mask, wc_t, bc, w_row, b_sc)


def _reference(question_hiddens, x_mask, conv_w, conv_b, lin_w, lin_b, *, bf16=True):
    x = question_hiddens
    w = conv_w[:, :, 0]
    if bf16:
        x = x.astype(jnp.bfloat16)
        w = w.astype(jnp.bfloat16)
    h = jnp.einsum("bld,hd->blh", x, w, preferred_element_type=jnp.float32) + conv_b
    h = jnp.maximum(h, 0.0)
    s = jnp.einsum("blh,h->bl", h, lin_w[0].astype(jnp.float32)) + lin_b[0]
    s = jnp.where(x_mask != 0, jnp.float32(-1e30), s)
    return jax.nn.softmax(s, axis=1)


if __name__ == "__main__":
    B, L, Din, Dh = 16, 8, 768, 128   # conv: 768 -> 128, attention input_size = 128

    key = jax.random.PRNGKey(0)
    k1, k2, k3, k4, k5 = jax.random.split(key, 5)

    # deterministic "parameters" (synthetic; shapes match the PyTorch module)
    conv_w = jax.random.normal(k1, (Dh, Din, 1), jnp.float32) * 0.02   # Conv1d weight
    conv_b = jax.random.normal(k2, (Dh,), jnp.float32) * 0.02          # Conv1d bias
    lin_w = jax.random.normal(k3, (1, Dh), jnp.float32) * 0.1          # Linear(Dh,1).weight
    lin_b = jax.random.normal(k4, (1,), jnp.float32) * 0.1             # Linear(Dh,1).bias

    question_hiddens = jax.random.normal(k5, (B, L, Din), jnp.float32)
    x_mask = jnp.zeros((B, L), jnp.int32)        # ByteTensor(...).fill_(0) -> nothing masked
    x_mask = x_mask.at[0, 5:].set(1)             # also exercise partial masking on row 0

    # auto tb -> tb=8, grid=(2,): >=2 steps so the pipeline/megacore path is exercised.
    alpha = linear_seq_attn_ques(question_hiddens, x_mask, conv_w, conv_b, lin_w, lin_b)
    alpha = jax.block_until_ready(alpha)

    ref_bf16 = _reference(question_hiddens, x_mask, conv_w, conv_b, lin_w, lin_b, bf16=True)
    ref_f32 = _reference(question_hiddens, x_mask, conv_w, conv_b, lin_w, lin_b, bf16=False)

    assert alpha.shape == (B, L)
    assert jnp.allclose(jnp.sum(alpha, axis=1), 1.0, atol=1e-3)          # exact normalization
    assert jnp.allclose(alpha, ref_bf16, atol=2e-3, rtol=2e-3)
    assert jnp.allclose(alpha, ref_f32, atol=5e-2, rtol=5e-2)            # bf16-vs-f32 drift
    assert float(jnp.max(alpha[0, 5:])) < 1e-6                           # masked positions ~ 0

    print("KERNEL_OK")
</pallas_src>

<mosaic_0001>
module attributes {stable_mosaic.version = 11 : i64} {
  func.func @_seq_attn_kernel(%arg0: i32, %arg1: memref<64x768xf32, #tpu.memory_space<vmem>>, %arg2: memref<8x8xi32, #tpu.memory_space<vmem>>, %arg3: memref<768x128xbf16, #tpu.memory_space<vmem>>, %arg4: memref<1x128xf32, #tpu.memory_space<vmem>>, %arg5: memref<1x128xf32, #tpu.memory_space<vmem>>, %arg6: memref<1x1xf32, #tpu.memory_space<smem>>, %arg7: memref<8x8xf32, #tpu.memory_space<vmem>>) attributes {dimension_semantics = [#tpu.dimension_semantics<parallel>], iteration_bounds = array<i64: 2>, scalar_prefetch = 0 : i64, scratch_operands = 0 : i64, tpu.core_type = #tpu.core_type<tc>, window_params = [{transform_indices = @transform_0, window_bounds = array<i64: 64, 768>}, {transform_indices = @transform_1, window_bounds = array<i64: 8, 8>}, {pipeline_mode = #tpu.pipeline_mode<synchronous>, transform_indices = @transform_2, window_bounds = array<i64: 768, 128>}, {pipeline_mode = #tpu.pipeline_mode<synchronous>, transform_indices = @transform_3, window_bounds = array<i64: 1, 128>}, {pipeline_mode = #tpu.pipeline_mode<synchronous>, transform_indices = @transform_4, window_bounds = array<i64: 1, 128>}, {transform_indices = @transform_5, window_bounds = array<i64: 1, 1>}, {transform_indices = @transform_6, window_bounds = array<i64: 8, 8>}]} {
    %c0 = arith.constant 0 : index
    %c0_0 = arith.constant 0 : index
    %0 = vector.load %arg1[%c0, %c0_0] : memref<64x768xf32, #tpu.memory_space<vmem>>, vector<64x768xf32>
    %1 = arith.truncf %0 : vector<64x768xf32> to vector<64x768xbf16>
    %c0_1 = arith.constant 0 : index
    %c0_2 = arith.constant 0 : index
    %2 = vector.load %arg3[%c0_1, %c0_2] : memref<768x128xbf16, #tpu.memory_space<vmem>>, vector<768x128xbf16>
    %cst = arith.constant dense<0.000000e+00> : vector<64x128xf32>
    %3 = tpu.matmul %1, %2, %cst {dimension_numbers = #tpu.dot_dimension_numbers<[1], [0], [0], [1], [0, 0, 1, 1], [], []>} : vector<64x768xbf16>, vector<768x128xbf16>, vector<64x128xf32> -> vector<64x128xf32>
    %c0_3 = arith.constant 0 : index
    %c0_4 = arith.constant 0 : index
    %4 = vector.load %arg4[%c0_3, %c0_4] : memref<1x128xf32, #tpu.memory_space<vmem>>, vector<1x128xf32>
    %5 = vector.broadcast %4 : vector<1x128xf32> to vector<64x128xf32>
    %6 = arith.addf %3, %5 : vector<64x128xf32>
    %cst_5 = arith.constant 0.000000e+00 : f32
    %7 = vector.broadcast %cst_5 : f32 to vector<64x128xf32>
    %8 = arith.maximumf %6, %7 : vector<64x128xf32>
    %c0_6 = arith.constant 0 : index
    %c0_7 = arith.constant 0 : index
    %9 = vector.load %arg5[%c0_6, %c0_7] : memref<1x128xf32, #tpu.memory_space<vmem>>, vector<1x128xf32>
    %10 = vector.broadcast %9 : vector<1x128xf32> to vector<64x128xf32>
    %11 = arith.mulf %8, %10 : vector<64x128xf32>
    %cst_8 = arith.constant dense<0.000000e+00> : vector<64xf32>
    %12 = vector.multi_reduction <add>, %11, %cst_8 [1] : vector<64x128xf32> to vector<64xf32>
    %13 = vector.shape_cast %12 : vector<64xf32> to vector<64x1xf32>
    %c0_9 = arith.constant 0 : index
    %c0_10 = arith.constant 0 : index
    %14 = memref.load %arg6[%c0_9, %c0_10] : memref<1x1xf32, #tpu.memory_space<smem>>
    %15 = vector.broadcast %14 : f32 to vector<64x1xf32>
    %16 = arith.addf %13, %15 : vector<64x1xf32>
    %17 = vector.shape_cast %16 : vector<64x1xf32> to vector<8x8xf32>
    %c0_11 = arith.constant 0 : index
    %c0_12 = arith.constant 0 : index
    %18 = vector.load %arg2[%c0_11, %c0_12] : memref<8x8xi32, #tpu.memory_space<vmem>>, vector<8x8xi32>
    %c0_i32 = arith.constant 0 : i32
    %19 = vector.broadcast %c0_i32 : i32 to vector<8x8xi32>
    %20 = arith.cmpi ne, %18, %19 : vector<8x8xi32>
    %cst_13 = arith.constant -1.000000e+30 : f32
    %21 = vector.broadcast %cst_13 : f32 to vector<8x8xf32>
    %22 = arith.select %20, %21, %17 : vector<8x8xi1>, vector<8x8xf32>
    %cst_14 = arith.constant dense<0xFF800000> : vector<8xf32>
    %23 = vector.multi_reduction <maximumf>, %22, %cst_14 [1] : vector<8x8xf32> to vector<8xf32>
    %24 = vector.shape_cast %23 : vector<8xf32> to vector<8x1xf32>
    %25 = vector.broadcast %24 : vector<8x1xf32> to vector<8x8xf32>
    %26 = arith.subf %22, %25 : vector<8x8xf32>
    %27 = math.exp %26 : vector<8x8xf32>
    %cst_15 = arith.constant dense<0.000000e+00> : vector<8xf32>
    %28 = vector.multi_reduction <add>, %27, %cst_15 [1] : vector<8x8xf32> to vector<8xf32>
    %29 = vector.shape_cast %28 : vector<8xf32> to vector<8x1xf32>
    %30 = vector.broadcast %29 : vector<8x1xf32> to vector<8x8xf32>
    %31 = arith.divf %27, %30 : vector<8x8xf32>
    %c0_16 = arith.constant 0 : index
    %c0_17 = arith.constant 0 : index
    %32 = vector.load %arg7[%c0_16, %c0_17] : memref<8x8xf32, #tpu.memory_space<vmem>>, vector<8x8xf32>
    tpu.vector_store %arg7[%c0_16, %c0_17], %31 {strides = array<i32>} : memref<8x8xf32, #tpu.memory_space<vmem>>, vector<8x8xf32>,
    return
  }
  func.func @transform_0(%arg0: i32) -> (i32, i32) {
    %c0_i32 = arith.constant 0 : i32
    %c0_i32_0 = arith.constant 0 : i32
    return %arg0, %c0_i32 : i32, i32
  }
  func.func @transform_1(%arg0: i32) -> (i32, i32) {
    %c0_i32 = arith.constant 0 : i32
    %c0_i32_0 = arith.constant 0 : i32
    return %arg0, %c0_i32 : i32, i32
  }
  func.func @transform_2(%arg0: i32) -> (i32, i32) {
    %c0_i32 = arith.constant 0 : i32
    %c0_i32_0 = arith.constant 0 : i32
    %c0_i32_1 = arith.constant 0 : i32
    return %c0_i32, %c0_i32_0 : i32, i32
  }
  func.func @transform_3(%arg0: i32) -> (i32, i32) {
    %c0_i32 = arith.constant 0 : i32
    %c0_i32_0 = arith.constant 0 : i32
    %c0_i32_1 = arith.constant 0 : i32
    return %c0_i32, %c0_i32_0 : i32, i32
  }
  func.func @transform_4(%arg0: i32) -> (i32, i32) {
    %c0_i32 = arith.constant 0 : i32
    %c0_i32_0 = arith.constant 0 : i32
    %c0_i32_1 = arith.constant 0 : i32
    return %c0_i32, %c0_i32_0 : i32, i32
  }
  func.func @transform_5(%arg0: i32) -> (i32, i32) {
    %c0_i32 = arith.constant 0 : i32
    %c0_i32_0 = arith.constant 0 : i32
    %c0_i32_1 = arith.constant 0 : i32
    return %c0_i32, %c0_i32_0 : i32, i32
  }
  func.func @transform_6(%arg0: i32) -> (i32, i32) {
    %c0_i32 = arith.constant 0 : i32
    %c0_i32_0 = arith.constant 0 : i32
    return %arg0, %c0_i32 : i32, i32
  }
}

</mosaic_0001>

<bundles_post_ra>
// kernel: tpu_custom_call.1
= control target key start
LH: loop header
LB: loop body
LE: loop exit
PB: predicated region body
PF: predicated region fallthrough
CT: control target
= control target key end

     0   :  { %s1826_s0 = inlined_call_operand.hbm [shape: f32[128,768], index: 0, kind: input, shape index: {}]   ;;  %s1827_s1 = inlined_call_operand.vmem [shape: s32[16,8], index: 1, kind: input, shape index: {}]   ;;  %s1828_s2 = inlined_call_operand.hbm [shape: bf16[768,128], index: 2, kind: input, shape index: {}]   ;;  %s1829_s3 = inlined_call_operand.vmem [shape: f32[1,128], index: 3, kind: input, shape index: {}]   ;;  %s1830_s4 = inlined_call_operand.vmem [shape: f32[1,128], index: 4, kind: input, shape index: {}]   ;;  %s1831_s5 = inlined_call_operand.<no memory space> [shape: f32[1,1], index: 5, kind: input, shape index: {}]   ;;  %s1832_s6 = inlined_call_operand.vmem [shape: f32[16,8], index: 6, kind: output, shape index: {}]  }
   0x1   :  { %11 = sst [smem:[#allocation2]] %s1831_s5 }
   0x2   :  { %12 = vsyncpa [#allocation4], 0 }
   0x3   :  { %14 = vsyncpa [#allocation4 + $0x1], 0 }
   0x4   :  { %15 = vsyncpa [#allocation6], 0  ;;  %s1613_s23 = smov 0   ;;  %s1615_s24 = smov 0  }
   0x5   :  { %s1617_s25 = smov 0   ;;  %s1619_s26 = smov 0  }
   0x6 LB: > { %s1632_s5 = sadd.s32 4294967295, %s1568_s26   ;;  %p41_p0 = scmp.ne.s32.totalorder %s1560_s24, %s1556_s23  ;;  %s1568_s26 = sphi %s1619_s26, %s1839_s26   ;;  %s1564_s25 = sphi %s1617_s25, %s1838_s25   ;;  %s1560_s24 = sphi %s1615_s24, %s1837_s24   ;;  %s1556_s23 = sphi %s1613_s23, %s1836_s23  }
   0x7   : > { %p42_p1 = scmp.eq.s32.totalorder %s1632_s5, 0  ;;  %p1139_p2 = scmp.ge.s32.totalorder %s1568_s26, 1 }
   0x8   : > { %p188_p3 = scmp.lt.s32.totalorder %s1568_s26, 3  ;;  %s199_s30 = sshll.u32 %s1828_s2, 4  ;;  %s200_s30 = int_to_ptr.hbm [resolvable:$true] %s199_s30 }
   0x9   : > { %p1640_p4 = por %p42_p1, %p41_p0  ;;  %s1570_s8 = smov [#allocation5]  }
   0xa   : > { %p1647_p5 = pnand %p1139_p2, %p188_p3  ;;  %s201_s9 = sshll.u32 %s1570_s8, 4  ;;  %s202_s9 = int_to_ptr.vmem [resolvable:$true] %s201_s9 }
   0xb   : > { %s1656_s10 = sadd.s32 1, %s1568_s26   ;;  %s1571_s11 = smov 64  }
   0xc   : > { %p1416_p6 = pneg %p1647_p5  ;;  %s1572_s12 = smov 4  }
   0xd   : > { %s25_s13 = ssub.s32 %s1568_s26, %s1656_s10  ;;  %s28_s14 = sadd.s32 1, %s1564_s25 }
   0xe   : > { %p1417_p7 = pnand %p1416_p6, %p42_p1  ;;  %p26_p8 = scmp.eq.s32.totalorder %s25_s13, 0 }
   0xf   : > { %p35_p9 = scmp.ne.s32.totalorder %s1564_s25, %s1560_s24  ;;  %p36_p10 = scmp.eq.s32.totalorder %s1568_s26, 0 }
  0x10   : > { %1419 = dma.hbm_to_vmem [thread:$0]  (!%p1417_p7), %s200_s30, 6144, %s202_s9, [#allocation6], %s1571_s11, %s1571_s11, %s1572_s12  }
  0x11   : > { %p1425_p11 = scmp.lt.s32.totalorder %s1568_s26, 2  ;;  %p37_p12 = por %p36_p10, %p35_p9 }
  0x12   : > { %s1666_s15 = scalar_select %p26_p8, %s1564_s25, %s28_s14  }
  0x13   : > { %s224_s16 = sand.u32 1, %s1564_s25   ;;  %s1408_s18 = smul.u32 384, %s1568_s26 }
  0x14   : > { %s1407_s17 = smul.u32 384, %s224_s16  ;;  %p1670_p13 = pnand %p1425_p11, %p37_p12 }
  0x15   : > { %s234_s22 = scalar_lea.hbm %s1826_s0, %s1408_s18  ;;  %s225_s30 = scalar_lea.sflag [#allocation4], %s224_s16 }
  0x16   : > { %s228_s23 = scalar_lea.vmem [#allocation3], %s1407_s17  ;;  %s235_s29 = sshll.u32 %s234_s22, 4  ;;  %s236_s29 = int_to_ptr.hbm [resolvable:$true] %s235_s29 }
  0x17   : > { %s237_s28 = sshll.u32 %s228_s23, 4  ;;  %s1500_s8 = sshra.s32 %s236_s29, 4  ;;  %s238_s28 = int_to_ptr.vmem [resolvable:$true] %s237_s28  ;;  %s1501_s8 = int_to_ptr.hbm [resolvable:$true] %s1500_s8 }
  0x18   : > { %s1502_s9 = scalar_lea.hbm %s1501_s8, 384  ;;  %p1504_p2 = pneg %p1670_p13 }
  0x19   : > { %p1503_p0 = scmp.ne.s32.totalorder %s1501_s8, %s1502_s9  ;;  %s1507_s12 = scalar_lea.hbm %s1826_s0, 768 }
  0x1a   : > { %p1508_p7 = scmp.lt.s32.totalorder %s1501_s8, %s1826_s0  ;;  %p1509_p8 = scmp.lt.s32.totalorder %s1507_s12, %s1502_s9 }
  0x1b   : > { %p1505_p3 = pnand %p1504_p2, %p1503_p0 }
  0x1c   : > { %p1510_p9 = por %p1509_p8, %p1508_p7 }
  0x1d   : > { %p1506_p6 = pneg %p1505_p3 }
  0x1f   : > { %p1511_p10 = pnand %p1510_p9, %p1506_p6 }
  0x21   : > { %1514 = shalt.err (!%p1511_p10)
}
  0x22   : > { %s1573_s16 = smov 768   ;;  %s1574_s17 = smov 48  }
  0x23   : > { %1423 = dma.hbm_to_vmem [thread:$0]  (!%p1670_p13), %s236_s29, 6144, %s238_s28, %s225_s30, %s1573_s16, %s1573_s16, %s1574_s17  }
  0x24   : > { %256 = sbr.rel (%p1647_p5) target bundleno = 695 (0x2b7), region = 44  ;;  %s258_s18 = sand.u32 (!%p1647_p5), 1, %s1560_s24  }
  0x25   : > { %s1409_s20 = smul.u32 (!%p1647_p5), 384, %s258_s18  ;;  %s259_s21 = scalar_lea.sflag (!%p1647_p5), [#allocation4], %s258_s18 }
  0x27   : > { %s1690_s22 = scalar_lea.vmem (!%p1647_p5), [#allocation3], %s1409_s20 }
  0x29   : > { %1547 = dma.done.wait (%p1640_p4), %s259_s21, 6144  }
  0x2a   : > { %1549 = vsyncadd (%p1640_p4), %s259_s21, 4294961152 }
  0x2b   : > { %1551 = dma.done.wait (%p42_p1), [#allocation6], 6144  }
  0x2c   : > { %1553 = vsyncadd (%p42_p1), [#allocation6], 4294961152  ;;  %v1350_v0 = vld [vmem:[#allocation5 + $0x38] sm:$0xff]  ;;  %v1349_v2 = vld [vmem:[#allocation5 + $0x30] sm:$0xff]  ;;  %s979_s28 = sld [smem:[#allocation2]]  ;;  %p301_p1 = scmp.lt.s32.totalorder %s1632_s5, 1 }
  0x2d   : > { %v1358_v1 = vld [vmem:[#allocation5 + $0x78] sm:$0xff]  ;;  %1391 = vmatpush.bf16.msra.mxu2 %v1350_v0  ;;  %v1357_v3 = vld [vmem:[#allocation5 + $0x70] sm:$0xff]  ;;  %769 = vmatpush.bf16.msra.mxu0 %v1350_v0  ;;  %v1348_v4 = vld [vmem:[#allocation5 + $0x28] sm:$0xff]  ;;  %vm1009_vm0 = vcmask 1041409   ;;  %vm1011_vm1 = vcmask 1042434   ;;  %vm1013_vm2 = vcmask 1043459  }
  0x2e   : > { %1399 = vmatpush.bf16.msra.mxu3 %v1358_v1  ;;  %798 = vmatpush.bf16.msra.mxu1 %v1358_v1  ;;  %v1356_v5 = vld [vmem:[#allocation5 + $0x68] sm:$0xff]  ;;  %v1347_v6 = vld [vmem:[#allocation5 + $0x20] sm:$0xff]  ;;  %v1346_v8 = vld [vmem:[#allocation5 + $0x18] sm:$0xff]  ;;  %s1841_s5 = smov (!%p301_p1, %s1632_s5), 1  ;;  %vm1015_vm3 = vcmask 1044484   ;;  %vm1017_vm4 = vcmask 1045509  }
  0x2f   : > { %v1355_v7 = vld [vmem:[#allocation5 + $0x60] sm:$0xff]  ;;  %v1354_v9 = vld [vmem:[#allocation5 + $0x58] sm:$0xff]  ;;  %v1345_v10 = vld [vmem:[#allocation5 + $0x10] sm:$0xff]  ;;  %s1147_s29 = sshll.u32 %s1841_s5, 3  ;;  %vm1019_vm5 = vcmask 1046534   ;;  %vm1021_vm6 = vcmask 1047559  }
  0x30   : > { %v1353_v11 = vld [vmem:[#allocation5 + $0x50] sm:$0xff]  ;;  %v1344_v12 = vld [vmem:[#allocation5 + $0x8] sm:$0xff]  ;;  %v1343_v14 = vld [vmem:[#allocation5] sm:$0xff]  ;;  %s304_s9 = scalar_lea.vmem %s1827_s1, %s1147_s29  ;;  %vm1025_vm8 = vcmask 64512   ;;  %s308_s12 = scalar_lea.vmem %s1832_s6, %s1147_s29 }
  0x31   : > { %1392 = vmatpush.bf16.msra.mxu2 %v1349_v2  ;;  %770 = vmatpush.bf16.msra.mxu0 %v1349_v2  ;;  %v1352_v13 = vld [vmem:[#allocation5 + $0x48] sm:$0xff]  ;;  %v1351_v15 = vld [vmem:[#allocation5 + $0x40] sm:$0xff]  ;;  %v339_v17 = vld [vmem:[%s1690_s22 + $0xf0] sm:$0xff] }
  0x32   : > { %1400 = vmatpush.bf16.msra.mxu3 %v1357_v3  ;;  %799 = vmatpush.bf16.msra.mxu1 %v1357_v3  ;;  %v333_v16 = vld [vmem:[%s1690_s22 + $0xc0] sm:$0xff]  ;;  %v334_v18 = vld [vmem:[%s1690_s22 + $0xc8] sm:$0xff]  ;;  %v340_v19 = vld [vmem:[%s1690_s22 + $0xf8] sm:$0xff] }
  0x33   : > { %v1366_v20 = vld [vmem:[#allocation5 + $0xb8] sm:$0xff]  ;;  %v309_v21 = vld [vmem:[%s1690_s22] sm:$0xff]  ;;  %v315_v22 = vld [vmem:[%s1690_s22 + $0x30] sm:$0xff]  ;;  %v369_v26 = vpack.c.bf16 %v339_v17, %v333_v16  ;;  %v370_v27 = vpack.c.bf16 %v340_v19, %v334_v18 }
  0x34   : > { %v1374_v23 = vld [vmem:[#allocation5 + $0xf8] sm:$0xff]  ;;  %v310_v24 = vld [vmem:[%s1690_s22 + $0x8] sm:$0xff]  ;;  %v357_v28 = vpack.c.bf16 %v315_v22, %v309_v21  ;;  %v1365_v32 = vld [vmem:[#allocation5 + $0xb0] sm:$0xff] }
  0x35   : > { %1393 = vmatpush.bf16.msra.mxu2 %v1348_v4  ;;  %771 = vmatpush.bf16.msra.mxu0 %v1348_v4  ;;  %v316_v25 = vld [vmem:[%s1690_s22 + $0x38] sm:$0xff]  ;;  %v1373_v33 = vld [vmem:[#allocation5 + $0xf0] sm:$0xff]  ;;  %v1364_v36 = vld [vmem:[#allocation5 + $0xa8] sm:$0xff] }
  0x36   : > { %1401 = vmatpush.bf16.msra.mxu3 %v1356_v5  ;;  %800 = vmatpush.bf16.msra.mxu1 %v1356_v5  ;;  %v1390_v29 = vld [vmem:[#allocation5 + $0x178] sm:$0xff]  ;;  %v358_v31 = vpack.c.bf16 %v316_v25, %v310_v24  ;;  %v1389_v34 = vld [vmem:[#allocation5 + $0x170] sm:$0xff]  ;;  %v1372_v37 = vld [vmem:[#allocation5 + $0xe8] sm:$0xff] }
  0x37   : > { %v1382_v30 = vld [vmem:[#allocation5 + $0x138] sm:$0xff]  ;;  %v1381_v35 = vld [vmem:[#allocation5 + $0x130] sm:$0xff]  ;;  %v1388_v38 = vld [vmem:[#allocation5 + $0x168] sm:$0xff] }
  0x38   : > { %v1380_v39 = vld [vmem:[#allocation5 + $0x128] sm:$0xff]  ;;  %v1363_v40 = vld [vmem:[#allocation5 + $0xa0] sm:$0xff]  ;;  %v351_v44 = vld [vmem:[%s1690_s22 + $0x150] sm:$0xff] }
  0x39   : > { %1394 = vmatpush.bf16.msra.mxu2 %v1347_v6  ;;  %772 = vmatpush.bf16.msra.mxu0 %v1347_v6  ;;  %v1371_v41 = vld [vmem:[#allocation5 + $0xe0] sm:$0xff]  ;;  %v346_v45 = vld [vmem:[%s1690_s22 + $0x128] sm:$0xff]  ;;  %v352_v46 = vld [vmem:[%s1690_s22 + $0x158] sm:$0xff] }
  0x3a   : > { %1402 = vmatpush.bf16.msra.mxu3 %v1355_v7  ;;  %801 = vmatpush.bf16.msra.mxu1 %v1355_v7  ;;  %v1379_v42 = vld [vmem:[#allocation5 + $0x120] sm:$0xff]  ;;  %v1362_v48 = vld [vmem:[#allocation5 + $0x98] sm:$0xff]  ;;  %v327_v50 = vld [vmem:[%s1690_s22 + $0x90] sm:$0xff]  ;;  %v376_v55 = vpack.c.bf16 %v352_v46, %v346_v45 }
  0x3b   : > { %v345_v43 = vld [vmem:[%s1690_s22 + $0x120] sm:$0xff]  ;;  %v1370_v51 = vld [vmem:[#allocation5 + $0xd8] sm:$0xff]  ;;  %v322_v52 = vld [vmem:[%s1690_s22 + $0x68] sm:$0xff] }
  0x3c   : > { %v1387_v47 = vld [vmem:[#allocation5 + $0x160] sm:$0xff]  ;;  %v328_v53 = vld [vmem:[%s1690_s22 + $0x98] sm:$0xff]  ;;  %v375_v54 = vpack.c.bf16 %v351_v44, %v345_v43  ;;  %v1361_v60 = vld [vmem:[#allocation5 + $0x90] sm:$0xff] }
  0x3d   : > { %1395 = vmatpush.bf16.msra.mxu2 %v1346_v8  ;;  %773 = vmatpush.bf16.msra.mxu0 %v1346_v8  ;;  %v321_v49 = vld [vmem:[%s1690_s22 + $0x60] sm:$0xff]  ;;  %v1386_v57 = vld [vmem:[#allocation5 + $0x158] sm:$0xff]  ;;  %v364_v59 = vpack.c.bf16 %v328_v53, %v322_v52  ;;  %v1369_v61 = vld [vmem:[#allocation5 + $0xd0] sm:$0xff] }
  0x3e   : > { %1403 = vmatpush.bf16.msra.mxu3 %v1354_v9  ;;  %802 = vmatpush.bf16.msra.mxu1 %v1354_v9  ;;  %v363_v56 = vpack.c.bf16 %v327_v50, %v321_v49  ;;  %v1378_v58 = vld [vmem:[#allocation5 + $0x118] sm:$0xff]  ;;  %v1385_v62 = vld [vmem:[#allocation5 + $0x150] sm:$0xff]  ;;  %v1360_v0 = vld [vmem:[#allocation5 + $0x88] sm:$0xff] }
  0x3f   : > { %v1377_v63 = vld [vmem:[#allocation5 + $0x110] sm:$0xff]  ;;  %v1368_v1 = vld [vmem:[#allocation5 + $0xc8] sm:$0xff]  ;;  %v1359_v4 = vld [vmem:[#allocation5 + $0x80] sm:$0xff] }
  0x40   : > { %v1384_v2 = vld [vmem:[#allocation5 + $0x148] sm:$0xff]  ;;  %v1367_v5 = vld [vmem:[#allocation5 + $0xc0] sm:$0xff]  ;;  %v311_v6 = vld [vmem:[%s1690_s22 + $0x10] sm:$0xff] }
  0x41   : > { %1396 = vmatpush.bf16.msra.mxu2 %v1345_v10  ;;  %774 = vmatpush.bf16.msra.mxu0 %v1345_v10  ;;  %v1376_v3 = vld [vmem:[#allocation5 + $0x108] sm:$0xff]  ;;  %v317_v7 = vld [vmem:[%s1690_s22 + $0x40] sm:$0xff]  ;;  %v312_v8 = vld [vmem:[%s1690_s22 + $0x18] sm:$0xff] }
  0x42   : > { %1404 = vmatpush.bf16.msra.mxu3 %v1353_v11  ;;  %803 = vmatpush.bf16.msra.mxu1 %v1353_v11  ;;  %v318_v9 = vld [vmem:[%s1690_s22 + $0x48] sm:$0xff]  ;;  %v1383_v10 = vld [vmem:[#allocation5 + $0x140] sm:$0xff]  ;;  %v359_v16 = vpack.c.bf16 %v317_v7, %v311_v6  ;;  %v324_v22 = vld [vmem:[%s1690_s22 + $0x78] sm:$0xff] }
  0x43   : > { %v1375_v11 = vld [vmem:[#allocation5 + $0x100] sm:$0xff]  ;;  %v360_v17 = vpack.c.bf16 %v318_v9, %v312_v8  ;;  %v331_v25 = vld [vmem:[%s1690_s22 + $0xb0] sm:$0xff]  ;;  %v348_v46 = vld [vmem:[%s1690_s22 + $0x138] sm:$0xff] }
  0x44   : > { %v329_v21 = vld [vmem:[%s1690_s22 + $0xa0] sm:$0xff]  ;;  %v347_v44 = vld [vmem:[%s1690_s22 + $0x130] sm:$0xff]  ;;  %v350_v50 = vld [vmem:[%s1690_s22 + $0x148] sm:$0xff] }
  0x45   : > { %1397 = vmatpush.bf16.msra.mxu2 %v1344_v12  ;;  %775 = vmatpush.bf16.msra.mxu0 %v1344_v12  ;;  %v313_v12 = vld [vmem:[%s1690_s22 + $0x20] sm:$0xff]  ;;  %v355_v49 = vld [vmem:[%s1690_s22 + $0x170] sm:$0xff] }
  0x46   : > { %1405 = vmatpush.bf16.msra.mxu3 %v1352_v13  ;;  %804 = vmatpush.bf16.msra.mxu1 %v1352_v13  ;;  %v319_v13 = vld [vmem:[%s1690_s22 + $0x50] sm:$0xff]  ;;  %v325_v24 = vld [vmem:[%s1690_s22 + $0x80] sm:$0xff] }
  0x47   : > { %v361_v18 = vpack.c.bf16 %v319_v13, %v313_v12  ;;  %v353_v45 = vld [vmem:[%s1690_s22 + $0x160] sm:$0xff] }
  0x48   : > { %v377_v52 = vpack.c.bf16 %v353_v45, %v347_v44  ;;  %v1765_v8 = vld [vmem:[%s1829_s3] ss:$0 sm:$0xff] }
  0x49   : > { %1398 = vmatpush.bf16.msra.mxu2 %v1343_v14  ;;  %776 = vmatpush.bf16.msra.mxu0 %v1343_v14  ;;  %v314_v14 = vld [vmem:[%s1690_s22 + $0x28] sm:$0xff] }
  0x4a   : > { %1406 = vmatpush.bf16.msra.mxu3 %v1351_v15  ;;  %805 = vmatpush.bf16.msra.mxu1 %v1351_v15  ;;  %v320_v15 = vld [vmem:[%s1690_s22 + $0x58] sm:$0xff] }
  0x4b   : > { %v362_v19 = vpack.c.bf16 %v320_v15, %v314_v14 }
  0x4c   : > { %787 = vmatmul.bf16.vlgmr.msra.gmra.mxu2 %v369_v26  ;;  %777 = vmatmul.bf16.vlgmr.msra.gmra.mxu0 %v357_v28  ;;  %v326_v26 = vld [vmem:[%s1690_s22 + $0x88] sm:$0xff] }
  0x4d   : > { %827 = vmatpush.bf16.msrb.mxu2 %v1366_v20  ;;  %816 = vmatmul.bf16.vlgmr.msra.gmra.mxu3 %v370_v27  ;;  %v323_v20 = vld [vmem:[%s1690_s22 + $0x70] sm:$0xff]  ;;  %v332_v27 = vld [vmem:[%s1690_s22 + $0xb8] sm:$0xff] }
  0x4e   : > { %856 = vmatpush.bf16.msrb.mxu3 %v1374_v23  ;;  %914 = vmatpush.bf16.msrb.mxu1 %v1390_v29  ;;  %v330_v23 = vld [vmem:[%s1690_s22 + $0xa8] sm:$0xff]  ;;  %v365_v28 = vpack.c.bf16 %v329_v21, %v323_v20 }
  0x4f   : > { %885 = vmatpush.bf16.msrb.mxu0 %v1382_v30  ;;  %806 = vmatmul.bf16.vlgmr.msra.gmra.mxu1 %v358_v31  ;;  %v366_v29 = vpack.c.bf16 %v330_v23, %v324_v22  ;;  %v367_v30 = vpack.c.bf16 %v331_v25, %v325_v24  ;;  %v368_v31 = vpack.c.bf16 %v332_v27, %v326_v26  ;;  %v1772_v23 = vld [vmem:[%s1830_s4] ss:$0 sm:$0xff] }
  0x51   : > { %828 = vmatpush.bf16.msrb.mxu2 %v1365_v32  ;;  %v335_v32 = vld [vmem:[%s1690_s22 + $0xd0] sm:$0xff] }
  0x52   : > { %857 = vmatpush.bf16.msrb.mxu3 %v1373_v33  ;;  %915 = vmatpush.bf16.msrb.mxu1 %v1389_v34  ;;  %v341_v33 = vld [vmem:[%s1690_s22 + $0x100] sm:$0xff]  ;;  %v336_v34 = vld [vmem:[%s1690_s22 + $0xd8] sm:$0xff] }
  0x53   : > { %886 = vmatpush.bf16.msrb.mxu0 %v1381_v35  ;;  %v342_v35 = vld [vmem:[%s1690_s22 + $0x108] sm:$0xff] }
  0x55   : > { %829 = vmatpush.bf16.msrb.mxu2 %v1364_v36  ;;  %v337_v36 = vld [vmem:[%s1690_s22 + $0xe0] sm:$0xff] }
  0x56   : > { %858 = vmatpush.bf16.msrb.mxu3 %v1372_v37  ;;  %916 = vmatpush.bf16.msrb.mxu1 %v1388_v38  ;;  %v343_v37 = vld [vmem:[%s1690_s22 + $0x110] sm:$0xff]  ;;  %v338_v38 = vld [vmem:[%s1690_s22 + $0xe8] sm:$0xff] }
  0x57   : > { %887 = vmatpush.bf16.msrb.mxu0 %v1380_v39  ;;  %v344_v39 = vld [vmem:[%s1690_s22 + $0x118] sm:$0xff] }
  0x58   : > { %v374_v43 = vpack.c.bf16 %v344_v39, %v338_v38 }
  0x59   : > { %830 = vmatpush.bf16.msrb.mxu2 %v1363_v40  ;;  %v371_v40 = vpack.c.bf16 %v341_v33, %v335_v32 }
  0x5a   : > { %859 = vmatpush.bf16.msrb.mxu3 %v1371_v41  ;;  %917 = vmatpush.bf16.msrb.mxu1 %v1387_v47  ;;  %v372_v41 = vpack.c.bf16 %v342_v35, %v336_v34  ;;  %v354_v47 = vld [vmem:[%s1690_s22 + $0x168] sm:$0xff] }
  0x5b   : > { %888 = vmatpush.bf16.msrb.mxu0 %v1379_v42  ;;  %v373_v42 = vpack.c.bf16 %v343_v37, %v337_v36  ;;  %v378_v53 = vpack.c.bf16 %v354_v47, %v348_v46 }
  0x5c   : > { %792 = vmatmul.bf16.gmra.mxu2 %v375_v54  ;;  %782 = vmatmul.bf16.gmra.mxu0 %v363_v56 }
  0x5d   : > { %831 = vmatpush.bf16.msrb.mxu2 %v1362_v48  ;;  %821 = vmatmul.bf16.gmra.mxu3 %v376_v55  ;;  %v349_v48 = vld [vmem:[%s1690_s22 + $0x140] sm:$0xff] }
  0x5e   : > { %860 = vmatpush.bf16.msrb.mxu3 %v1370_v51  ;;  %918 = vmatpush.bf16.msrb.mxu1 %v1386_v57  ;;  %v356_v51 = vld [vmem:[%s1690_s22 + $0x178] sm:$0xff]  ;;  %v379_v54 = vpack.c.bf16 %v355_v49, %v349_v48 }
  0x5f   : > { %889 = vmatpush.bf16.msrb.mxu0 %v1378_v58  ;;  %811 = vmatmul.bf16.gmra.mxu1 %v364_v59  ;;  %v380_v55 = vpack.c.bf16 %v356_v51, %v350_v50 }
  0x61   : > { %832 = vmatpush.bf16.msrb.mxu2 %v1361_v60 }
  0x62   : > { %861 = vmatpush.bf16.msrb.mxu3 %v1369_v61  ;;  %919 = vmatpush.bf16.msrb.mxu1 %v1385_v62 }
  0x63   : > { %890 = vmatpush.bf16.msrb.mxu0 %v1377_v63 }
  0x65   : > { %833 = vmatpush.bf16.msrb.mxu2 %v1360_v0 }
  0x66   : > { %862 = vmatpush.bf16.msrb.mxu3 %v1368_v1  ;;  %920 = vmatpush.bf16.msrb.mxu1 %v1384_v2 }
  0x67   : > { %891 = vmatpush.bf16.msrb.mxu0 %v1376_v3 }
  0x69   : > { %834 = vmatpush.bf16.msrb.mxu2 %v1359_v4 }
  0x6a   : > { %863 = vmatpush.bf16.msrb.mxu3 %v1367_v5  ;;  %921 = vmatpush.bf16.msrb.mxu1 %v1383_v10 }
  0x6b   : > { %892 = vmatpush.bf16.msrb.mxu0 %v1375_v11 }
  0x6c   : > { %835 = vmatmul.bf16.vlgmr.msrb.gmra.mxu2 %v359_v16 }
  0x6d   : > { %864 = vmatmul.bf16.vlgmr.msrb.gmra.mxu3 %v360_v17 }
  0x6e   : > { %893 = vmatmul.bf16.vlgmr.msrb.gmra.mxu0 %v361_v18 }
  0x6f   : > { %922 = vmatmul.bf16.vlgmr.msrb.gmra.mxu1 %v362_v19 }
  0x7c   : > { %840 = vmatmul.bf16.gmra.mxu2 %v365_v28 }
  0x7d   : > { %869 = vmatmul.bf16.gmra.mxu3 %v366_v29 }
  0x7e   : > { %898 = vmatmul.bf16.gmra.mxu0 %v367_v30 }
  0x7f   : > { %927 = vmatmul.bf16.gmra.mxu1 %v368_v31 }
  0x8c   : > { %845 = vmatmul.bf16.gmra.mxu2 %v371_v40 }
  0x8d   : > { %874 = vmatmul.bf16.gmra.mxu3 %v372_v41 }
  0x8e   : > { %903 = vmatmul.bf16.gmra.mxu0 %v373_v42 }
  0x8f   : > { %932 = vmatmul.bf16.gmra.mxu1 %v374_v43 }
  0x9c   : > { %850 = vmatmul.bf16.gmra.mxu2 %v377_v52 }
  0x9d   : > { %879 = vmatmul.bf16.gmra.mxu3 %v378_v53 }
  0x9e   : > { %908 = vmatmul.bf16.gmra.mxu0 %v379_v54 }
  0x9f   : > { %937 = vmatmul.bf16.gmra.mxu1 %v380_v55 }
  0xc9   : > { %v778_v56 = vpop.f32.mrf.mxu0 }
  0xca   : > { %v779_v9 = vadd.f32 %v1765_v8, %v778_v56 }
  0xcc   : > { %v807_v57 = vpop.f32.mrf.mxu1 }
  0xcd   : > { %v808_v12 = vadd.f32 %v807_v57, %v779_v9 }
  0xcf   : > { %v788_v58 = vpop.f32.mrf.mxu2 }
  0xd0   : > { %v1748_v59 = vpop.f32.mrf.mxu3  ;;  %v789_v52 = vadd.f32 %v1765_v8, %v788_v58 }
  0xd1   : > { %v780_v60 = vpop.f32.mrf.mxu0 }
  0xd2   : > { %v781_v16 = vadd.f32 %v1765_v8, %v780_v60  ;;  %v818_v57 = vadd.f32 %v1748_v59, %v789_v52 }
  0xd4   : > { %v809_v61 = vpop.f32.mrf.mxu1 }
  0xd5   : > { %v810_v21 = vadd.f32 %v809_v61, %v781_v16 }
  0xd7   : > { %v1750_v62 = vpop.f32.mrf.mxu2 }
  0xd8   : > { %v1752_v63 = vpop.f32.mrf.mxu3  ;;  %v791_v9 = vadd.f32 %v1765_v8, %v1750_v62 }
  0xd9   : > { %v783_v0 = vpop.f32.mrf.mxu0 }
  0xda   : > { %v784_v28 = vadd.f32 %v1765_v8, %v783_v0 }
  0xdc   : > { %v812_v1 = vpop.f32.mrf.mxu1 }
  0xdd   : > { %v813_v34 = vadd.f32 %v812_v1, %v784_v28 }
  0xdf   : > { %v1754_v2 = vpop.f32.mrf.mxu2 }
  0xe0   : > { %v1756_v3 = vpop.f32.mrf.mxu3 }
  0xe1   : > { %v785_v4 = vpop.f32.mrf.mxu0 }
  0xe2   : > { %v786_v40 = vadd.f32 %v1765_v8, %v785_v4 }
  0xe4   : > { %v814_v5 = vpop.f32.mrf.mxu1 }
  0xe5   : > { %v815_v46 = vadd.f32 %v814_v5, %v786_v40 }
  0xe7   : > { %v1758_v6 = vpop.f32.mrf.mxu2 }
  0xe8   : > { %v1760_v7 = vpop.f32.mrf.mxu3 }
  0xeb   : > { %v894_v10 = vpop.f32.mrf.mxu0 }
  0xec   : > { %v923_v11 = vpop.f32.mrf.mxu1 }
  0xef   : > { %v836_v13 = vpop.f32.mrf.mxu2 }
  0xf0   : > { %v865_v14 = vpop.f32.mrf.mxu3  ;;  %v837_v15 = vadd.f32 %v836_v13, %v808_v12  ;;  %v820_v12 = vadd.f32 %v1752_v63, %v791_v9 }
  0xf2   : > { %v866_v17 = vadd.f32 %v865_v14, %v837_v15 }
  0xf3   : > { %v896_v18 = vpop.f32.mrf.mxu0 }
  0xf4   : > { %v925_v19 = vpop.f32.mrf.mxu1  ;;  %v895_v20 = vadd.f32 %v894_v10, %v866_v17 }
  0xf6   : > { %v924_v22 = vadd.f32 %v923_v11, %v895_v20 }
  0xf7   : > { %v838_v24 = vpop.f32.mrf.mxu2 }
  0xf8   : > { %v867_v25 = vpop.f32.mrf.mxu3  ;;  %v839_v26 = vadd.f32 %v838_v24, %v810_v21  ;;  %v943_v27 = vmax.f32 %v924_v22, 0.0 }
  0xfa   : > { %v868_v29 = vadd.f32 %v867_v25, %v839_v26  ;;  %v955_v31 = vmul.f32 %v1772_v23, %v943_v27 }
  0xfb   : > { %v899_v30 = vpop.f32.mrf.mxu0 }
  0xfc   : > { %v928_v32 = vpop.f32.mrf.mxu1  ;;  %v897_v33 = vadd.f32 %v896_v18, %v868_v29  ;;  %963 = vadd.xlane.f32.xlu0 %v955_v31  ;;  %v796_v29 = vadd.f32 %v1765_v8, %v1758_v6 }
  0xfe   : > { %v926_v35 = vadd.f32 %v925_v19, %v897_v33  ;;  %v794_v19 = vadd.f32 %v1765_v8, %v1754_v2  ;;  %v825_v33 = vadd.f32 %v1760_v7, %v796_v29 }
  0xff   : > { %v841_v36 = vpop.f32.mrf.mxu2 }
 0x100   : > { %v870_v37 = vpop.f32.mrf.mxu3  ;;  %v842_v38 = vadd.f32 %v841_v36, %v813_v34  ;;  %v944_v39 = vmax.f32 %v926_v35, 0.0  ;;  %v823_v22 = vadd.f32 %v1756_v3, %v794_v19 }
 0x102   : > { %v871_v41 = vadd.f32 %v870_v37, %v842_v38  ;;  %v956_v43 = vmul.f32 %v1772_v23, %v944_v39 }
 0x103   : > { %v901_v42 = vpop.f32.mrf.mxu0 }
 0x104   : > { %v900_v44 = vadd.f32 %v899_v30, %v871_v41  ;;  %965 = vadd.xlane.f32.xlu0 %v956_v43  ;;  %v930_v45 = vpop.f32.mrf.mxu1 }
 0x106   : > { %v929_v47 = vadd.f32 %v928_v32, %v900_v44 }
 0x107   : > { %v843_v48 = vpop.f32.mrf.mxu2 }
 0x108   : > { %v872_v49 = vpop.f32.mrf.mxu3  ;;  %v844_v50 = vadd.f32 %v843_v48, %v815_v46  ;;  %v945_v51 = vmax.f32 %v929_v47, 0.0  ;;  %v999_v47 = vlaneseq  ;;  %v980_v48 = vstv %s979_s28 }
 0x10a   : > { %v873_v53 = vadd.f32 %v872_v49, %v844_v50  ;;  %v957_v54 = vmul.f32 %v1772_v23, %v945_v51 }
 0x10b   : > { %v904_v56 = vpop.f32.mrf.mxu0 }
 0x10c   : > { %v902_v55 = vadd.f32 %v901_v42, %v873_v53  ;;  %967 = vadd.xlane.f32.xlu1 %v957_v54  ;;  %v933_v60 = vpop.f32.mrf.mxu1  ;;  %v1000_v53 = vand.u32 127, %v999_v47 }
 0x10e   : > { %v931_v61 = vadd.f32 %v930_v45, %v902_v55 }
 0x10f   : > { %v846_v0 = vpop.f32.mrf.mxu2 }
 0x110   : > { %v875_v1 = vpop.f32.mrf.mxu3  ;;  %v847_v4 = vadd.f32 %v846_v0, %v818_v57  ;;  %v946_v5 = vmax.f32 %v931_v61, 0.0 }
 0x112   : > { %v876_v10 = vadd.f32 %v875_v1, %v847_v4  ;;  %v958_v58 = vmul.f32 %v1772_v23, %v946_v5 }
 0x113   : > { %v906_v13 = vpop.f32.mrf.mxu0 }
 0x114   : > { %v905_v11 = vadd.f32 %v904_v56, %v876_v10  ;;  %969 = vadd.xlane.f32.xlu1 %v958_v58  ;;  %v935_v18 = vpop.f32.mrf.mxu1 }
 0x116   : > { %v934_v14 = vadd.f32 %v933_v60, %v905_v11 }
 0x117   : > { %v848_v15 = vpop.f32.mrf.mxu2 }
 0x118   : > { %v877_v59 = vpop.f32.mrf.mxu3  ;;  %v849_v16 = vadd.f32 %v848_v15, %v820_v12  ;;  %v947_v17 = vmax.f32 %v934_v14, 0.0 }
 0x11a   : > { %v878_v20 = vadd.f32 %v877_v59, %v849_v16  ;;  %v959_v62 = vmul.f32 %v1772_v23, %v947_v17 }
 0x11b   : > { %v909_v28 = vpop.f32.mrf.mxu0 }
 0x11c   : > { %v907_v21 = vadd.f32 %v906_v13, %v878_v20  ;;  %971 = vadd.xlane.f32.xlu2 %v959_v62  ;;  %v938_v2 = vpop.f32.mrf.mxu1  ;;  %v989_v13 = vld [vmem:[%s304_s9] sm:$0xff] }
 0x11d   : > { %vm990_vm7 = vcmp.ne.s32.totalorder %v989_v13, 0 }
 0x11e   : > { %v936_v24 = vadd.f32 %v935_v18, %v907_v21 }
 0x11f   : > { %v851_v25 = vpop.f32.mrf.mxu2 }
 0x120   : > { %v880_v63 = vpop.f32.mrf.mxu3  ;;  %v852_v26 = vadd.f32 %v851_v25, %v823_v22  ;;  %v948_v27 = vmax.f32 %v936_v24, 0.0 }
 0x122   : > { %v881_v30 = vadd.f32 %v880_v63, %v852_v26  ;;  %v960_v31 = vmul.f32 %v1772_v23, %v948_v27 }
 0x123   : > { %v911_v40 = vpop.f32.mrf.mxu0 }
 0x124   : > { %v910_v32 = vadd.f32 %v909_v28, %v881_v30  ;;  %973 = vadd.xlane.f32.xlu2 %v960_v31  ;;  %v940_v6 = vpop.f32.mrf.mxu1 }
 0x126   : > { %v939_v34 = vadd.f32 %v938_v2, %v910_v32 }
 0x127   : > { %v853_v35 = vpop.f32.mrf.mxu2 }
 0x128   : > { %v854_v3 = vadd.f32 %v853_v35, %v825_v33  ;;  %v949_v36 = vmax.f32 %v939_v34, 0.0  ;;  %v882_v37 = vpop.f32.mrf.mxu3 }
 0x12a   : > { %v883_v38 = vadd.f32 %v882_v37, %v854_v3  ;;  %v961_v39 = vmul.f32 %v1772_v23, %v949_v36 }
 0x12c   : > { %v912_v41 = vadd.f32 %v911_v40, %v883_v38  ;;  %975 = vadd.xlane.f32.xlu0 %v961_v39 }
 0x12e   : > { %v941_v8 = vadd.f32 %v940_v6, %v912_v41 }
 0x130   : > { %v950_v42 = vmax.f32 %v941_v8, 0.0 }
 0x132   : > { %v962_v43 = vmul.f32 %v1772_v23, %v950_v42 }
 0x134   : > { %977 = vadd.xlane.f32.xlu1 %v962_v43 }
 0x16f   : > { %v964_v7 = vpop.xlane.xlu0 %963 }
 0x170   : > { %v981_v54 = vadd.f32 %v980_v48, %v964_v7 }
 0x172   : > { %v1001_v1 = vperm.slane %v981_v54, %v1000_v53 }
 0x177   : > { %v966_v46 = vpop.xlane.xlu0 %965 }
 0x178   : > { %v982_v50 = vadd.f32 %v980_v48, %v966_v46 }
 0x17a   : > { %v1002_v57 = vperm.slane %v982_v50, %v1000_v53 }
 0x17c   : > { %v1010_v9 = vsel %vm1009_vm0, %v1002_v57, %v1001_v1 }
 0x17f   : > { %v968_v44 = vpop.xlane.xlu1 %967 }
 0x180   : > { %v983_v51 = vadd.f32 %v980_v48, %v968_v44 }
 0x182   : > { %v1003_v61 = vperm.slane %v983_v51, %v1000_v53 }
 0x184   : > { %v1012_v58 = vsel %vm1011_vm1, %v1003_v61, %v1010_v9 }
 0x187   : > { %v970_v49 = vpop.xlane.xlu1 %969 }
 0x188   : > { %v984_v23 = vadd.f32 %v980_v48, %v970_v49 }
 0x18a   : > { %v1004_v4 = vperm.slane %v984_v23, %v1000_v53 }
 0x18c   : > { %v1014_v14 = vsel %vm1013_vm2, %v1004_v4, %v1012_v58 }
 0x18f   : > { %v972_v45 = vpop.xlane.xlu2 %971 }
 0x190   : > { %v985_v56 = vadd.f32 %v980_v48, %v972_v45 }
 0x192   : > { %v1005_v5 = vperm.slane %v985_v56, %v1000_v53 }
 0x194   : > { %v1016_v59 = vsel %vm1015_vm3, %v1005_v5, %v1014_v14 }
 0x197   : > { %v974_v52 = vpop.xlane.xlu2 %973 }
 0x198   : > { %v986_v60 = vadd.f32 %v980_v48, %v974_v52 }
 0x19a   : > { %v1006_v10 = vperm.slane %v986_v60, %v1000_v53 }
 0x19c   : > { %v1018_v17 = vsel %vm1017_vm4, %v1006_v10, %v1016_v59 }
 0x19f   : > { %v976_v55 = vpop.xlane.xlu0 %975 }
 0x1a0   : > { %v987_v0 = vadd.f32 %v980_v48, %v976_v55 }
 0x1a2   : > { %v1007_v11 = vperm.slane %v987_v0, %v1000_v53 }
 0x1a4   : > { %v1020_v18 = vsel %vm1019_vm5, %v1007_v11, %v1018_v17 }
 0x1a7   : > { %v978_v12 = vpop.xlane.xlu1 %977 }
 0x1a8   : > { %v988_v15 = vadd.f32 %v980_v48, %v978_v12 }
 0x1aa   : > { %v1008_v16 = vperm.slane %v988_v15, %v1000_v53 }
 0x1ac   : > { %v1022_v19 = vsel %vm1021_vm6, %v1008_v16, %v1020_v18 }
 0x1ad   : > { %v1024_v20 = vsel %vm990_vm7, -1e+30, %v1022_v19 }
 0x1ae   : > { %v1026_v62 = vsel %vm1025_vm8, %v1024_v20, -inf }
 0x1af   : > { %1027 = vmax.xlane.f32.xlu2 %v1026_v62 }
 0x222   : > { %v1028_v21 = vpop.xlane.xlu2 %1027 }
 0x223   : > { %v1029_v22 = vsub.f32 %v1024_v20, %v1028_v21 }
 0x225   : > { %v1030_v24 = vmul.f32 1.442695, %v1029_v22 }
 0x227   : > { %1466 = vpow2.f32 %v1030_v24 }
 0x22d   : > { %v1467_v25 = vpop.eup %1466 }
 0x22e   : > { %v1032_v63 = vsel %vm1025_vm8, %v1467_v25, 0.0 }
 0x22f   : > { %1033 = vadd.xlane.f32.xlu0 %v1032_v63 }
 0x2a2   : > { %v1034_v26 = vpop.xlane.xlu0 %1033 }
 0x2a3   : > { %1468 = vrcp.f32 %v1034_v26  ;;  %v1046_v30 = vand.u32 2147483648, %v1034_v26  ;;  %v1044_v2 = vand.u32 2147483647, %v1034_v26  ;;  %vm1040_vm10 = vweird.f32 %v1034_v26 }
 0x2a5   : > { %v1047_v33 = vor.u32 1.1754944e-38, %v1046_v30  ;;  %vm1045_vm12 = vcmp.eq.f32.partialorder %v1044_v2, 8.507059e+37 }
 0x2a9   : > { %v1469_v27 = vpop.eup %1468 }
 0x2aa   : > { %v1036_v28 = vmul.f32 %v1469_v27, %v1034_v26  ;;  %vm1041_vm9 = vweird.f32 %v1469_v27 }
 0x2ab   : > { %vm1042_vm11 = vmor %vm1040_vm10, %vm1041_vm9 }
 0x2ac   : > { %v1037_v29 = vsub.f32 1.0, %v1036_v28 }
 0x2ae   : > { %v1038_v31 = vmul.f32 %v1469_v27, %v1037_v29 }
 0x2b0   : > { %v1039_v32 = vadd.f32 %v1469_v27, %v1038_v31 }
 0x2b2   : > { %v1043_v34 = vsel %vm1042_vm11, %v1469_v27, %v1039_v32 }
 0x2b3   : > { %v1048_v35 = vsel %vm1045_vm12, %v1047_v33, %v1043_v34 }
 0x2b4   : > { %v1049_v3 = vmul.f32 %v1467_v25, %v1048_v35 }
 0x2b6   : > { %1050 = vst.msk [vmem:[%s308_s12] sm:$0xff] %vm1025_vm8, %v1049_v3 }
 0x2b7 PF: > { %p18_p4 = scmp.ge.s32.totalorder %s1656_s10, 4   ;;  %s1836_s23 = smov %s1560_s24 }
 0x2b8   : > { %s1837_s24 = smov %s1564_s25  ;;  %s1838_s25 = smov %s1666_s15 }
 0x2b9   : > { %s1839_s26 = smov %s1656_s10  ;;  %20 = sbr.rel (!%p18_p4) target bundleno = 6 (0x6), region = 91 }
 0x2be   :  { %1070 = vsyncpa [#allocation4], 1 }
 0x2bf   :  { %1072 = vsyncpa [#allocation4 + $0x1], 1 }
 0x2c0   :  { %1073 = vsyncpa [#allocation6], 1 }

</bundles_post_ra>
